<compile_context>
chip_gen: v7x
topology: tpu7x:2x2x1
jax: 0.10.0
libtpu: 0.0.40
codegen_flags: <defaults>
</compile_context>

<pallas_src>
import jax
import jax.numpy as jnp
from jax import lax
from jax.experimental import pallas as pl
from jax.experimental.pallas import tpu as pltpu


def _rdrop_partial_kernel(x_ref, lab_ref, out_ref):
    """Accumulates (ce_sum, kl_sum) for one pair-packed [TB, 2C] tile.

    x_ref:   (TB, 2C)  logits; lanes [0:C] = dropout pass A, [C:2C] = pass B
    lab_ref: (TB, 2)   int32 labels for the pass-A / pass-B rows
    out_ref: (1, 2)    SMEM f32 [ce_sum, kl_sum] partials for this split,
                       resident across the inner (reduction) grid axis.
    """
    i = pl.program_id(1)

    @pl.when(i == 0)
    def _init():
        out_ref[0, 0] = jnp.float32(0.0)
        out_ref[0, 1] = jnp.float32(0.0)

    x = x_ref[...].astype(jnp.float32)      # (TB, 2C)
    lab = lab_ref[...]                      # (TB, 2) int32
    tb, two_c = x.shape
    c = two_c // 2

    xa = x[:, :c]                           # dropout pass A logits
    xb = x[:, c:]                           # dropout pass B logits

    def _stats(z):
        # Single exp pass per row; reuse e for both log-softmax and softmax.
        m = jnp.max(z, axis=-1, keepdims=True)
        e = jnp.exp(z - m)
        se = jnp.sum(e, axis=-1, keepdims=True)
        lp = (z - m) - jnp.log(se)
        s = e * pl.reciprocal(se)           # exact; approx=True fine at bf16 tolerances
        return lp, s

    lpa, sa = _stats(xa)
    lpb, sb = _stats(xb)

    # Cross-entropy numerator: -sum_i log p[i, label_i] over both passes
    # (the mean over N rows is applied in the wrapper).
    col = lax.broadcasted_iota(jnp.int32, (tb, c), 1)
    ce = -(jnp.sum(jnp.where(col == lab[:, 0:1], lpa, 0.0)) +
           jnp.sum(jnp.where(col == lab[:, 1:2], lpb, 0.0)))

    # KLDiv(lp_a, s_b) + KLDiv(lp_b, s_a), pointwise-summed:
    #   s_b*(lp_b - lp_a) + s_a*(lp_a - lp_b) = (s_a - s_b)*(lp_a - lp_b)
    kl = jnp.sum((sa - sb) * (lpa - lpb))

    out_ref[0, 0] += ce
    out_ref[0, 1] += kl


def _choose_tiles(b, row_bytes, block_rows, splits):
    """Pick (tile_rows, n_splits, inner_blocks) for the pair-row count b."""
    if block_rows is None:
        if b % 8 != 0:
            block_rows = b                      # single block covering all rows
        else:
            block_rows = 8
            for cand in (512, 256, 128, 64, 32, 16, 8):
                if b % cand == 0 and cand * row_bytes <= (4 << 20):
                    block_rows = cand           # biggest tile <= ~4 MiB / buffer
                    break
    assert b % block_rows == 0
    assert block_rows % 8 == 0 or block_rows == b
    nb = b // block_rows
    if splits is None:
        splits = 2 if (nb % 2 == 0 and nb > 1) else 1
    assert nb % splits == 0
    return block_rows, splits, nb // splits


def rdrop_loss(y_pred, y_true, alpha=4, rank="adjacent",
               block_rows=None, splits=None):
    """Pallas implementation of RDropLoss.forward(y_pred, y_true).

    y_pred: [btz*2, num_labels] float (f32 or bf16)
    y_true: [btz*2] integer class indices
    Returns a scalar float32 loss.
    """
    assert rank in {"adjacent", "updown"}
    n, c = y_pred.shape
    assert n % 2 == 0, "y_pred must have an even number of rows"
    b = n // 2
    y_true = y_true.astype(jnp.int32)

    if rank == "adjacent":
        # Free reshape: row k of xp = [x_{2k} | x_{2k+1}] packed along lanes.
        xp = y_pred.reshape(b, 2 * c)
        tp = y_true.reshape(b, 2)
    else:  # 'updown': one lane-concat copy pairs row i with row i + b.
        xp = jnp.concatenate([y_pred[:b], y_pred[b:]], axis=-1)
        tp = jnp.stack([y_true[:b], y_true[b:]], axis=-1)

    row_bytes = 2 * c * xp.dtype.itemsize
    tb, n_splits, ni = _choose_tiles(b, row_bytes, block_rows, splits)

    cost = pl.CostEstimate(
        flops=10 * n * c,
        transcendentals=n * c + 4 * n,
        bytes_accessed=n * c * xp.dtype.itemsize + n * 4 + n_splits * 8,
    )

    partials = pl.pallas_call(
        _rdrop_partial_kernel,
        out_shape=jax.ShapeDtypeStruct((n_splits, 2), jnp.float32),
        grid=(n_splits, ni),
        in_specs=[
            pl.BlockSpec((tb, 2 * c), lambda si, ii: (si * ni + ii, 0)),
            pl.BlockSpec((tb, 2), lambda si, ii: (si * ni + ii, 0)),
        ],
        out_specs=pl.BlockSpec((1, 2), lambda si, ii: (si, 0),
                               memory_space=pltpu.MemorySpace.SMEM),
        compiler_params=pltpu.CompilerParams(
            dimension_semantics=("parallel", "arbitrary")),
        cost_estimate=cost,
    )(xp, tp)

    ce_sum = jnp.sum(partials[:, 0])
    kl_sum = jnp.sum(partials[:, 1])
    return ce_sum / n + kl_sum / (b * c) * (alpha / 4.0)


def _rdrop_loss_ref(y_pred, y_true, alpha=4, rank="adjacent"):
    # Pure-JAX reference mirroring the PyTorch module.
    n = y_pred.shape[0]
    logp = jax.nn.log_softmax(y_pred, axis=-1)
    ce = -jnp.mean(jnp.take_along_axis(logp, y_true[:, None], axis=-1))
    if rank == "adjacent":
        p1, p2 = y_pred[1::2], y_pred[::2]
    else:
        half = n // 2
        p1, p2 = y_pred[:half], y_pred[half:]
    lp1, lp2 = jax.nn.log_softmax(p1, -1), jax.nn.log_softmax(p2, -1)
    s1, s2 = jnp.exp(lp1), jnp.exp(lp2)
    kl1 = s2 * (lp2 - lp1)
    kl2 = s1 * (lp1 - lp2)
    return ce + jnp.mean(kl1 + kl2) / 4.0 * alpha


if __name__ == "__main__":
    key = jax.random.PRNGKey(0)
    k1, k2, k3, k4 = jax.random.split(key, 4)

    # Test 1: small shape, single block, rank='adjacent' (defaults).
    btz, nl = 4, 8
    y_pred = jax.random.normal(k1, (btz * 2, nl), dtype=jnp.float32)
    labels = jax.random.randint(k2, (btz,), 0, nl, dtype=jnp.int32)
    y_true = jnp.repeat(labels, 2)  # adjacent pairs share the same label
    got = jax.block_until_ready(rdrop_loss(y_pred, y_true, alpha=4))
    ref = _rdrop_loss_ref(y_pred, y_true, alpha=4)
    assert jnp.allclose(got, ref, rtol=1e-5, atol=1e-5), (got, ref)

    # Test 2: forces a (splits=2, inner=2) accumulating grid, rank='adjacent'.
    btz2, nl2 = 64, 12
    y_pred2 = jax.random.normal(k3, (btz2 * 2, nl2), dtype=jnp.float32)
    y_true2 = jax.random.randint(k4, (btz2 * 2,), 0, nl2, dtype=jnp.int32)
    got2 = jax.block_until_ready(
        rdrop_loss(y_pred2, y_true2, alpha=4, block_rows=16, splits=2))
    ref2 = _rdrop_loss_ref(y_pred2, y_true2, alpha=4)
    assert jnp.allclose(got2, ref2, rtol=1e-5, atol=1e-5), (got2, ref2)

    # Test 3: rank='updown' with the same tiled grid.
    got3 = jax.block_until_ready(
        rdrop_loss(y_pred2, y_true2, alpha=4, rank="updown",
                   block_rows=16, splits=2))
    ref3 = _rdrop_loss_ref(y_pred2, y_true2, alpha=4, rank="updown")
    assert jnp.allclose(got3, ref3, rtol=1e-5, atol=1e-5), (got3, ref3)

    print("KERNEL_OK")
</pallas_src>

<mosaic_0001>
module attributes {stable_mosaic.version = 11 : i64} {
  func.func @_rdrop_partial_kernel(%arg0: i32, %arg1: i32, %arg2: memref<4x16xf32, #tpu.memory_space<vmem>>, %arg3: memref<4x2xi32, #tpu.memory_space<vmem>>, %arg4: memref<1x2xf32, #tpu.memory_space<smem>>) attributes {dimension_semantics = [#tpu.dimension_semantics<parallel>, #tpu.dimension_semantics<arbitrary>], iteration_bounds = array<i64: 1, 1>, scalar_prefetch = 0 : i64, scratch_operands = 0 : i64, tpu.core_type = #tpu.core_type<tc>, window_params = [{transform_indices = @transform_0, window_bounds = array<i64: 4, 16>}, {transform_indices = @transform_1, window_bounds = array<i64: 4, 2>}, {transform_indices = @transform_2, window_bounds = array<i64: 1, 2>}]} {
    %c0_i32 = arith.constant 0 : i32
    %0 = arith.cmpi eq, %arg1, %c0_i32 : i32
    %1 = arith.extui %0 : i1 to i32
    %c0_i32_0 = arith.constant 0 : i32
    %2 = arith.cmpi ne, %1, %c0_i32_0 : i32
    scf.if %2 {
      %cst_20 = arith.constant 0.000000e+00 : f32
      %c0_21 = arith.constant 0 : index
      %c0_22 = arith.constant 0 : index
      %71 = memref.load %arg4[%c0_21, %c0_22] : memref<1x2xf32, #tpu.memory_space<smem>>
      memref.store %cst_20, %arg4[%c0_21, %c0_22] : memref<1x2xf32, #tpu.memory_space<smem>>
      %cst_23 = arith.constant 0.000000e+00 : f32
      %c0_24 = arith.constant 0 : index
      %c1_25 = arith.constant 1 : index
      %72 = memref.load %arg4[%c0_24, %c1_25] : memref<1x2xf32, #tpu.memory_space<smem>>
      memref.store %cst_23, %arg4[%c0_24, %c1_25] : memref<1x2xf32, #tpu.memory_space<smem>>
    } else {
    }
    %c0 = arith.constant 0 : index
    %c0_1 = arith.constant 0 : index
    %3 = vector.load %arg2[%c0, %c0_1] : memref<4x16xf32, #tpu.memory_space<vmem>>, vector<4x16xf32>
    %c0_2 = arith.constant 0 : index
    %c0_3 = arith.constant 0 : index
    %4 = vector.load %arg3[%c0_2, %c0_3] : memref<4x2xi32, #tpu.memory_space<vmem>>, vector<4x2xi32>
    %5 = vector.extract_strided_slice %3 {offsets = [0, 0], sizes = [4, 8], strides = [1, 1]} : vector<4x16xf32> to vector<4x8xf32>
    %6 = vector.extract_strided_slice %3 {offsets = [0, 8], sizes = [4, 8], strides = [1, 1]} : vector<4x16xf32> to vector<4x8xf32>
    %cst = arith.constant dense<0xFF800000> : vector<4xf32>
    %7 = vector.multi_reduction <maximumf>, %5, %cst [1] : vector<4x8xf32> to vector<4xf32>
    %8 = vector.shape_cast %7 : vector<4xf32> to vector<4x1xf32>
    %9 = vector.broadcast %8 : vector<4x1xf32> to vector<4x8xf32>
    %10 = arith.subf %5, %9 : vector<4x8xf32>
    %11 = math.exp %10 : vector<4x8xf32>
    %cst_4 = arith.constant dense<0.000000e+00> : vector<4xf32>
    %12 = vector.multi_reduction <add>, %11, %cst_4 [1] : vector<4x8xf32> to vector<4xf32>
    %13 = vector.shape_cast %12 : vector<4xf32> to vector<4x1xf32>
    %14 = vector.broadcast %8 : vector<4x1xf32> to vector<4x8xf32>
    %15 = arith.subf %5, %14 : vector<4x8xf32>
    %16 = math.log %13 : vector<4x1xf32>
    %17 = vector.broadcast %16 : vector<4x1xf32> to vector<4x8xf32>
    %18 = arith.subf %15, %17 : vector<4x8xf32>
    %19 = tpu.reciprocal %13 : vector<4x1xf32> -> vector<4x1xf32>
    %20 = vector.broadcast %19 : vector<4x1xf32> to vector<4x8xf32>
    %21 = arith.mulf %11, %20 : vector<4x8xf32>
    %cst_5 = arith.constant dense<0xFF800000> : vector<4xf32>
    %22 = vector.multi_reduction <maximumf>, %6, %cst_5 [1] : vector<4x8xf32> to vector<4xf32>
    %23 = vector.shape_cast %22 : vector<4xf32> to vector<4x1xf32>
    %24 = vector.broadcast %23 : vector<4x1xf32> to vector<4x8xf32>
    %25 = arith.subf %6, %24 : vector<4x8xf32>
    %26 = math.exp %25 : vector<4x8xf32>
    %cst_6 = arith.constant dense<0.000000e+00> : vector<4xf32>
    %27 = vector.multi_reduction <add>, %26, %cst_6 [1] : vector<4x8xf32> to vector<4xf32>
    %28 = vector.shape_cast %27 : vector<4xf32> to vector<4x1xf32>
    %29 = vector.broadcast %23 : vector<4x1xf32> to vector<4x8xf32>
    %30 = arith.subf %6, %29 : vector<4x8xf32>
    %31 = math.log %28 : vector<4x1xf32>
    %32 = vector.broadcast %31 : vector<4x1xf32> to vector<4x8xf32>
    %33 = arith.subf %30, %32 : vector<4x8xf32>
    %34 = tpu.reciprocal %28 : vector<4x1xf32> -> vector<4x1xf32>
    %35 = vector.broadcast %34 : vector<4x1xf32> to vector<4x8xf32>
    %36 = arith.mulf %26, %35 : vector<4x8xf32>
    %37 = tpu.iota {dimensions = array<i32: 1>} : vector<4x8xi32>
    %38 = vector.extract_strided_slice %4 {offsets = [0, 0], sizes = [4, 1], strides = [1, 1]} : vector<4x2xi32> to vector<4x1xi32>
    %39 = vector.broadcast %38 : vector<4x1xi32> to vector<4x8xi32>
    %40 = arith.cmpi eq, %37, %39 : vector<4x8xi32>
    %cst_7 = arith.constant 0.000000e+00 : f32
    %41 = vector.broadcast %cst_7 : f32 to vector<4x8xf32>
    %42 = arith.select %40, %18, %41 : vector<4x8xi1>, vector<4x8xf32>
    %43 = vector.shape_cast %42 : vector<4x8xf32> to vector<1x4x8xf32>
    %cst_8 = arith.constant dense<0.000000e+00> : vector<1xf32>
    %44 = vector.multi_reduction <add>, %43, %cst_8 [1, 2] : vector<1x4x8xf32> to vector<1xf32>
    %45 = vector.shape_cast %44 : vector<1xf32> to vector<1x1x1xf32>
    %46 = vector.extract %45[0, 0, 0] : f32 from vector<1x1x1xf32>
    %47 = vector.extract_strided_slice %4 {offsets = [0, 1], sizes = [4, 1], strides = [1, 1]} : vector<4x2xi32> to vector<4x1xi32>
    %48 = vector.broadcast %47 : vector<4x1xi32> to vector<4x8xi32>
    %49 = arith.cmpi eq, %37, %48 : vector<4x8xi32>
    %cst_9 = arith.constant 0.000000e+00 : f32
    %50 = vector.broadcast %cst_9 : f32 to vector<4x8xf32>
    %51 = arith.select %49, %33, %50 : vector<4x8xi1>, vector<4x8xf32>
    %52 = vector.shape_cast %51 : vector<4x8xf32> to vector<1x4x8xf32>
    %cst_10 = arith.constant dense<0.000000e+00> : vector<1xf32>
    %53 = vector.multi_reduction <add>, %52, %cst_10 [1, 2] : vector<1x4x8xf32> to vector<1xf32>
    %54 = vector.shape_cast %53 : vector<1xf32> to vector<1x1x1xf32>
    %55 = vector.extract %54[0, 0, 0] : f32 from vector<1x1x1xf32>
    %56 = arith.addf %46, %55 : f32
    %cst_11 = arith.constant 0.000000e+00 : f32
    %57 = arith.subf %cst_11, %56 : f32
    %58 = arith.subf %21, %36 : vector<4x8xf32>
    %59 = arith.subf %18, %33 : vector<4x8xf32>
    %60 = arith.mulf %58, %59 : vector<4x8xf32>
    %61 = vector.shape_cast %60 : vector<4x8xf32> to vector<1x4x8xf32>
    %cst_12 = arith.constant dense<0.000000e+00> : vector<1xf32>
    %62 = vector.multi_reduction <add>, %61, %cst_12 [1, 2] : vector<1x4x8xf32> to vector<1xf32>
    %63 = vector.shape_cast %62 : vector<1xf32> to vector<1x1x1xf32>
    %64 = vector.extract %63[0, 0, 0] : f32 from vector<1x1x1xf32>
    %c0_13 = arith.constant 0 : index
    %c0_14 = arith.constant 0 : index
    %65 = memref.load %arg4[%c0_13, %c0_14] : memref<1x2xf32, #tpu.memory_space<smem>>
    %66 = arith.addf %65, %57 : f32
    %c0_15 = arith.constant 0 : index
    %c0_16 = arith.constant 0 : index
    %67 = memref.load %arg4[%c0_15, %c0_16] : memref<1x2xf32, #tpu.memory_space<smem>>
    memref.store %66, %arg4[%c0_15, %c0_16] : memref<1x2xf32, #tpu.memory_space<smem>>
    %c0_17 = arith.constant 0 : index
    %c1 = arith.constant 1 : index
    %68 = memref.load %arg4[%c0_17, %c1] : memref<1x2xf32, #tpu.memory_space<smem>>
    %69 = arith.addf %68, %64 : f32
    %c0_18 = arith.constant 0 : index
    %c1_19 = arith.constant 1 : index
    %70 = memref.load %arg4[%c0_18, %c1_19] : memref<1x2xf32, #tpu.memory_space<smem>>
    memref.store %69, %arg4[%c0_18, %c1_19] : memref<1x2xf32, #tpu.memory_space<smem>>
    return
  }
  func.func @transform_0(%arg0: i32, %arg1: i32) -> (i32, i32) {
    %c1_i32 = arith.constant 1 : i32
    %0 = arith.muli %arg0, %c1_i32 : i32
    %1 = arith.addi %0, %arg1 : i32
    %c0_i32 = arith.constant 0 : i32
    %c0_i32_0 = arith.constant 0 : i32
    return %1, %c0_i32 : i32, i32
  }
  func.func @transform_1(%arg0: i32, %arg1: i32) -> (i32, i32) {
    %c1_i32 = arith.constant 1 : i32
    %0 = arith.muli %arg0, %c1_i32 : i32
    %1 = arith.addi %0, %arg1 : i32
    %c0_i32 = arith.constant 0 : i32
    %c0_i32_0 = arith.constant 0 : i32
    return %1, %c0_i32 : i32, i32
  }
  func.func @transform_2(%arg0: i32, %arg1: i32) -> (i32, i32) {
    %c0_i32 = arith.constant 0 : i32
    %c0_i32_0 = arith.constant 0 : i32
    return %arg0, %c0_i32 : i32, i32
  }
}

</mosaic_0001>

<bundles_post_ra>
// kernel: tpu_custom_call.1
= control target key start
LH: loop header
LB: loop body
LE: loop exit
PB: predicated region body
PF: predicated region fallthrough
CT: control target
= control target key end

     0   :  { %vm71_vm0 = vcmask 126016   ;;  %vm56_vm1 = vcmask 60416   ;;  %s262_s0 = inlined_call_operand.vmem [shape: f32[4,16], index: 0, kind: input, shape index: {}]   ;;  %s263_s1 = inlined_call_operand.vmem [shape: s32[4,2], index: 1, kind: input, shape index: {}]   ;;  %s264_s2 = inlined_call_operand.hbm [shape: f32[1,2], index: 2, kind: output, shape index: {}]  }
   0x1   :  { %v54_v0 = vld [vmem:[%s262_s0] sm:$0xf] }
   0x2   :  { %7 = vsyncpa [#allocation3], 0  ;;  %v72_v1 = vsel %vm71_vm0, %v54_v0, -inf  ;;  %v57_v2 = vsel %vm56_vm1, %v54_v0, -inf  ;;  %v216_v6 = vmov 0   ;;  %s217_s11 = smov 120   ;;  %v90_v19 = vlaneseq }
   0x3   :  { %73 = vmax.xlane.f32.xlu0 %v72_v1  ;;  %58 = vmax.xlane.f32.xlu1 %v57_v2  ;;  %v55_v8 = vld [vmem:[%s263_s1] sm:$0xf]  ;;  %v218_v9 = vmov 1   ;;  %s204_s19 = scalar_lea.hbm %s264_s2, 16 }
   0x4   :  { %190 = vset.pattern.permute.xlu1 %v216_v6  ;;  %191 = vset.pattern.permute.xlu0 %v218_v9  ;;  %v91_v22 = vand.u32 127, %v90_v19  ;;  %p205_p0 = scmp.ne.s32.totalorder %s264_s2, %s204_s19  ;;  %p208_p1 = scmp.lt.u32.totalorder %s204_s19, %s264_s2 }
   0x6   :  { %p210_p2 = pnand %p208_p1, %p205_p0 }
  0x90   :  { %v74_v3 = vpop.xlane.xlu0 %73  ;;  %v59_v10 = vpop.xlane.xlu1 %58 }
  0x91   :  { %v75_v4 = vsub.f32 %v54_v0, %v74_v3  ;;  %v60_v11 = vsub.f32 %v54_v0, %v59_v10 }
  0x93   :  { %v76_v5 = vmul.f32 1.442695, %v75_v4  ;;  %v61_v12 = vmul.f32 1.442695, %v60_v11 }
  0x95   :  { %192 = vpow2.f32 %v76_v5 }
  0x96   :  { %194 = vpow2.f32 %v61_v12 }
  0x9f   :  { %v193_v7 = vpop.eup %192 }
  0xa0   :  { %79 = vrot.lane.b32.xlu0 %v193_v7, %s217_s11  ;;  %v195_v13 = vpop.eup %194 }
  0xa1   :  { %v63_v16 = vsel %vm56_vm1, %v195_v13, 0.0 }
  0xa4   :  { %108 = vperm.xlu0 %191, %v55_v8  }
 0x112   :  { %v80_v14 = vpop.permute.xlu0 %79 }
 0x113   :  { %v82_v15 = vsel %vm56_vm1, %v80_v14, 0.0 }
 0x114   :  { %83 = vadd.xlane.f32.xlu1 %v82_v15 }
 0x118   :  { %64 = vadd.xlane.f32.xlu1 %v63_v16 }
 0x123   :  { %v109_v32 = vpop.permute.xlu0 %108 }
 0x124   :  { %vm110_vm3 = vcmp.eq.s32.totalorder %v91_v22, %v109_v32 }
 0x129   :  { %93 = vperm.xlu1 %190, %v55_v8  }
 0x1a1   :  { %v84_v17 = vpop.xlane.xlu1 %83 }
 0x1a2   :  { %196 = vlog2.f32 %v84_v17 }
 0x1a3   :  { %198 = vrcp.f32 %v84_v17 }
 0x1a5   :  { %v65_v18 = vpop.xlane.xlu1 %64 }
 0x1a6   :  { %200 = vlog2.f32 %v65_v18 }
 0x1a7   :  { %202 = vrcp.f32 %v65_v18 }
 0x1a9   :  { %v94_v25 = vpop.permute.xlu1 %93 }
 0x1aa   :  { %vm95_vm2 = vcmp.eq.s32.totalorder %v91_v22, %v94_v25 }
 0x1ac   :  { %v197_v20 = vpop.eup %196 }
 0x1ad   :  { %v86_v21 = vmul.f32 0.6931472, %v197_v20  ;;  %v199_v23 = vpop.eup %198 }
 0x1ae   :  { %v89_v28 = vmul.f32 %v199_v23, %v193_v7 }
 0x1af   :  { %v87_v24 = vsub.f32 %v75_v4, %v86_v21 }
 0x1b0   :  { %v201_v26 = vpop.eup %200 }
 0x1b1   :  { %v67_v27 = vmul.f32 0.6931472, %v201_v26  ;;  %112 = vrot.lane.b32.xlu1 %v87_v24, %s217_s11  ;;  %v203_v33 = vpop.eup %202 }
 0x1b2   :  { %v70_v37 = vmul.f32 %v203_v33, %v195_v13 }
 0x1b3   :  { %v68_v29 = vsub.f32 %v60_v11, %v67_v27 }
 0x1b5   :  { %129 = vrot.lane.b32.xlu1 %v89_v28, %s217_s11  ;;  %v96_v30 = vsel %vm95_vm2, %v68_v29, 0.0 }
 0x1b6   :  { %v97_v31 = vsel %vm56_vm1, %v96_v30, 0.0 }
 0x1b7   :  { %98 = vadd.xlane.f32.xlu0 %v97_v31 }
 0x223   :  { %v113_v34 = vpop.permute.xlu1 %112 }
 0x224   :  { %v115_v35 = vsel %vm110_vm3, %v113_v34, 0.0  ;;  %v133_v39 = vsub.f32 %v68_v29, %v113_v34 }
 0x225   :  { %v116_v36 = vsel %vm56_vm1, %v115_v35, 0.0 }
 0x226   :  { %117 = vadd.xlane.f32.xlu1 %v116_v36 }
 0x227   :  { %v130_v38 = vpop.permute.xlu1 %129 }
 0x228   :  { %v132_v40 = vsub.f32 %v70_v37, %v130_v38 }
 0x22a   :  { %v134_v41 = vmul.f32 %v133_v39, %v132_v40 }
 0x22c   :  { %v135_v42 = vsel %vm56_vm1, %v134_v41, 0.0 }
 0x22d   :  { %136 = vadd.xlane.f32.xlu0 %v135_v42 }
 0x244   :  { %v99_v43 = vpop.xlane.xlu0 %98 }
 0x245   :  { %v100_v44 = vrot.slane %v99_v43, 4 }
 0x247   :  { %v101_v45 = vadd.f32 %v100_v44, %v99_v43 }
 0x249   :  { %v102_v46 = vrot.slane %v101_v45, 2 }
 0x24b   :  { %v103_v47 = vadd.f32 %v102_v46, %v101_v45 }
 0x24d   :  { %v104_v48 = vrot.slane %v103_v47, 1 }
 0x24f   :  { %v105_v49 = vadd.f32 %v104_v48, %v103_v47 }
 0x251   :  { %179 = vpush %v105_v49 }
 0x282   :  { %s180_s1 = spop %179 }
 0x2b3   :  { %v118_v50 = vpop.xlane.xlu1 %117 }
 0x2b4   :  { %v119_v51 = vrot.slane %v118_v50, 4 }
 0x2b6   :  { %v120_v52 = vadd.f32 %v119_v51, %v118_v50 }
 0x2b8   :  { %v121_v53 = vrot.slane %v120_v52, 2 }
 0x2ba   :  { %v122_v54 = vadd.f32 %v121_v53, %v120_v52  ;;  %v137_v55 = vpop.xlane.xlu0 %136 }
 0x2bb   :  { %v138_v56 = vrot.slane %v137_v55, 4 }
 0x2bc   :  { %v123_v57 = vrot.slane %v122_v54, 1 }
 0x2bd   :  { %v139_v58 = vadd.f32 %v138_v56, %v137_v55 }
 0x2be   :  { %v124_v59 = vadd.f32 %v123_v57, %v122_v54 }
 0x2bf   :  { %v140_v60 = vrot.slane %v139_v58, 2 }
 0x2c0   :  { %181 = vpush %v124_v59 }
 0x2c1   :  { %v141_v61 = vadd.f32 %v140_v60, %v139_v58 }
 0x2c3   :  { %v142_v62 = vrot.slane %v141_v61, 1 }
 0x2c5   :  { %v143_v63 = vadd.f32 %v142_v62, %v141_v61 }
 0x2c7   :  { %183 = vpush %v143_v63 }
 0x2f1   :  { %s182_s13 = spop %181 }
 0x2f2   :  { %s126_s14 = sadd.f32 %s182_s13, %s180_s1 }
 0x2f4   :  { %s127_s15 = ssub.f32 0.0, %s126_s14 }
 0x2f6   :  { %148 = sst [smem:[#allocation2]] %s127_s15 }
 0x2f8   :  { %s184_s16 = spop %183 }
 0x2f9   :  { %152 = sst [smem:[#allocation2 + $0x1]] %s184_s16 }
 0x2fa   :  { %213 = shalt.err (!%p210_p2)
}
 0x2fb   :  { %s219_s24 = smov [#allocation2]  }
 0x2fc   :  { %160 = dma.smem_to_hbm %s219_s24, 16, %s264_s2, [#allocation3]  }
 0x2fd   :  { %214 = dma.done.wait [#allocation3], 16  }
 0x2fe   :  { %215 = vsyncadd [#allocation3], 4294967280 }
 0x2ff   :  { %164 = sfence }
 0x300   :  { %165 = vsyncpa [#allocation3], 1 }

</bundles_post_ra>
